<compile_context>
chip_gen: v7x
topology: tpu7x:2x2x1
jax: 0.10.0
libtpu: 0.0.40
codegen_flags: <defaults>
</compile_context>

<pallas_src>
import functools

import jax
import jax.numpy as jnp
from jax import lax
from jax.experimental import pallas as pl
from jax.experimental.pallas import tpu as pltpu


def _round_up(n, m):
    return ((n + m - 1) // m) * m


def _lstm_kernel(x_ref, wih_ref, b_ref, whh_ref, wfc_ref, bfc_ref,
                 out_ref, gx_scr, *, T, Bp, H, Gp, unroll_static):
    """Full LSTM recurrence + final Linear in one kernel invocation.

    x_ref   : (T*Bp, D)   time-major, batch-padded, flattened input
    wih_ref : (D, Gp)     W_ih^T, packed gates [i|f|g|o], lane-padded to Gp
    b_ref   : (1, Gp)     b_ih + b_hh, packed gates
    whh_ref : (H, Gp)     W_hh^T, packed gates (real contraction dim H, no pad)
    wfc_ref : (H, Op)     W_fc^T, lane-padded
    bfc_ref : (1, Op)     b_fc, lane-padded
    out_ref : (Bp, Op)
    gx_scr  : (T*Bp, Gp)  VMEM scratch holding the precomputed input gates
    """
    # ---- Phase 1: input projection for ALL time steps as one big MXU matmul ----
    gx_scr[...] = (
        jnp.dot(x_ref[...], wih_ref[...], preferred_element_type=jnp.float32)
        + b_ref[...]
    )

    mm_dtype = whh_ref.dtype

    # Lane mask selecting the g (cell-candidate) block; hoisted out of the time
    # loop (JAX does not CSE broadcast_in_dim).
    lane = lax.broadcasted_iota(jnp.int32, (Bp, Gp), 1)
    is_g = (lane >= 2 * H) & (lane < 3 * H)

    def cell(gx_t, h, c):
        # One narrow recurrent matmul per step: (Bp, H) @ (H, Gp).
        # TODO(synk): keep W_hh resident in the MXU across the recurrence via
        # pltpu.matmul_push_rhs / matmul_acc_lhs / matmul_pop; with the packed
        # layout the RHS is already 4x narrower so this is left for a later pass.
        gates = gx_t + jnp.dot(h.astype(mm_dtype), whh_ref[...],
                               preferred_element_type=jnp.float32)
        # Two full-width EUP activations + one VPU select (instead of four
        # per-gate activation launches): tanh on the g block, sigmoid elsewhere.
        act = jnp.where(is_g, jnp.tanh(gates), jax.nn.sigmoid(gates))
        # Static lane slices bring each gate into its own (Bp, H) block.
        i = act[:, 0 * H:1 * H]
        f = act[:, 1 * H:2 * H]
        g = act[:, 2 * H:3 * H]
        o = act[:, 3 * H:4 * H]
        c_new = f * c + i * g
        h_new = o * jnp.tanh(c_new)
        return h_new, c_new

    # h0 = c0 = zeros (matches torch.zeros(...) in the module's forward);
    # carried as values (vregs), no VMEM round trip per step.
    h = jnp.zeros((Bp, H), jnp.float32)
    c = jnp.zeros((Bp, H), jnp.float32)

    if unroll_static:
        # Short static trip count: full unroll, static sublane-aligned slices.
        for t in range(T):
            h, c = cell(gx_scr[t * Bp:(t + 1) * Bp, :], h, c)
    else:
        # Long sequences: visible loop with partial unroll so the scheduler can
        # overlap the gx slice load / EUP-VPU tail of step t with step t+1 setup.
        def body(t, carry):
            h, c = carry
            row = pl.multiple_of(t * Bp, Bp)
            return cell(gx_scr[pl.ds(row, Bp), :], h, c)

        h, c = lax.fori_loop(0, T, body, (h, c), unroll=8)

    # fc(out[:, -1, :]) == final hidden state @ W_fc^T + b_fc (lane-dense store).
    out_ref[...] = (
        jnp.dot(h.astype(mm_dtype), wfc_ref[...],
                preferred_element_type=jnp.float32)
        + bfc_ref[...]
    )


def lstm_forward(x, params, *, hidden_dim, output_dim, input_dim,
                 matmul_dtype=jnp.float32):
    """Wrapper: layout plumbing / padding in plain JAX, hot loop in Pallas.

    matmul_dtype: set to jnp.bfloat16 on v6e/v7x for ~2x MXU/DMA savings when
    the application tolerates bf16 matmul inputs; default f32 matches the
    PyTorch module's numerics exactly.
    """
    if x.ndim != 3:
        x = x.reshape(x.shape[0], -1, input_dim)
    x = x.astype(jnp.float32)
    B, T, D = x.shape
    H, O = hidden_dim, output_dim

    Bp = _round_up(max(B, 8), 8)              # sublane-aligned batch
    Gp = _round_up(max(4 * H, 128), 128)      # packed gate lanes [i|f|g|o]
    Op = _round_up(max(O, 128), 128)          # lane-dense output store

    w_ih, w_hh, b_ih, b_hh, w_fc, b_fc = params

    wih_p = (jnp.zeros((D, Gp), jnp.float32)
             .at[:, :4 * H].set(w_ih.T.astype(jnp.float32))
             .astype(matmul_dtype))                                    # (D, Gp)
    whh_p = (jnp.zeros((H, Gp), jnp.float32)
             .at[:, :4 * H].set(w_hh.T.astype(jnp.float32))
             .astype(matmul_dtype))                                    # (H, Gp)
    b_p = (jnp.zeros((1, Gp), jnp.float32)
           .at[:, :4 * H].set((b_ih + b_hh).astype(jnp.float32).reshape(1, 4 * H)))
    wfc_p = (jnp.zeros((H, Op), jnp.float32)
             .at[:, :O].set(w_fc.T.astype(jnp.float32))
             .astype(matmul_dtype))                                    # (H, Op)
    bfc_p = (jnp.zeros((1, Op), jnp.float32)
             .at[:, :O].set(b_fc.astype(jnp.float32).reshape(1, O)))   # (1, Op)

    # Time-major, batch-padded, flattened input: (B,T,D) -> (T*Bp, D).
    # NOTE: padded batch rows see gx = bias and therefore carry bounded nonzero
    # garbage h/c through the recurrence.  Rows are independent and sliced off
    # below, so this is harmless -- but do NOT rely on padded rows being zero
    # if a batch reduction / cross-core accumulation is ever added.
    x_tm = jnp.transpose(x, (1, 0, 2))                                 # (T, B, D)
    x_tm = jnp.pad(x_tm, ((0, 0), (0, Bp - B), (0, 0)))                # (T, Bp, D)
    x_flat = x_tm.reshape(T * Bp, D).astype(matmul_dtype)

    unroll_static = (T <= 16)
    kernel = functools.partial(_lstm_kernel, T=T, Bp=Bp, H=H, Gp=Gp,
                               unroll_static=unroll_static)

    itemsize = jnp.dtype(matmul_dtype).itemsize
    flops = int(2 * (T * Bp) * D * Gp          # input projection (phase 1)
                + T * 2 * Bp * H * Gp          # recurrent matmuls
                + 2 * Bp * H * Op)             # final fc
    transcendentals = int(T * (2 * Bp * Gp + Bp * H))
    bytes_accessed = int(itemsize * (T * Bp * D + D * Gp + H * Gp + H * Op)
                         + 4 * (Gp + Op + Bp * Op))

    # VMEM budget: inputs + gx scratch + output are all resident at once.
    vmem_needed = (itemsize * (T * Bp * D + D * Gp + H * Gp + H * Op)
                   + 4 * (Gp + Op + Bp * Op + T * Bp * Gp))
    vmem_limit = int(min(max(2 * vmem_needed, 32 * 1024 * 1024),
                         96 * 1024 * 1024))
    # TODO(synk): when T*Bp grows enough that the (T*Bp, Gp) gx scratch nears the
    # per-generation VMEM budget (64 MiB on v7x), stream x/gx over a T grid (or
    # pltpu.emit_pipeline) instead of holding them fully resident.
    # TODO(synk): on v7x with B >= 16, split the batch into two tiles via
    # grid=(2,) + dimension_semantics=("parallel",) to use both TensorCores.

    out_p = pl.pallas_call(
        kernel,
        out_shape=jax.ShapeDtypeStruct((Bp, Op), jnp.float32),
        in_specs=[
            pl.BlockSpec(memory_space=pltpu.MemorySpace.VMEM),  # x_flat
            pl.BlockSpec(memory_space=pltpu.MemorySpace.VMEM),  # W_ih^T (packed)
            pl.BlockSpec(memory_space=pltpu.MemorySpace.VMEM),  # bias   (packed)
            pl.BlockSpec(memory_space=pltpu.MemorySpace.VMEM),  # W_hh^T (packed)
            pl.BlockSpec(memory_space=pltpu.MemorySpace.VMEM),  # W_fc^T (padded)
            pl.BlockSpec(memory_space=pltpu.MemorySpace.VMEM),  # b_fc   (padded)
        ],
        out_specs=pl.BlockSpec(memory_space=pltpu.MemorySpace.VMEM),
        scratch_shapes=[
            pltpu.VMEM((T * Bp, Gp), jnp.float32),  # precomputed input gates
        ],
        compiler_params=pltpu.CompilerParams(vmem_limit_bytes=vmem_limit),
        cost_estimate=pl.CostEstimate(
            flops=flops,
            transcendentals=transcendentals,
            bytes_accessed=bytes_accessed,
        ),
    )(x_flat, wih_p, b_p, whh_p, wfc_p, bfc_p)

    return out_p[:B, :O]


def _reference_forward(x, params, *, hidden_dim, output_dim):
    """Pure-JAX reference mirroring PyTorch nn.LSTM (gate order i,f,g,o)."""
    w_ih, w_hh, b_ih, b_hh, w_fc, b_fc = params
    B, T, D = x.shape
    H = hidden_dim
    h = jnp.zeros((B, H), jnp.float32)
    c = jnp.zeros((B, H), jnp.float32)
    for t in range(T):
        gates = x[:, t, :] @ w_ih.T + h @ w_hh.T + b_ih + b_hh
        i = jax.nn.sigmoid(gates[:, 0 * H:1 * H])
        f = jax.nn.sigmoid(gates[:, 1 * H:2 * H])
        g = jnp.tanh(gates[:, 2 * H:3 * H])
        o = jax.nn.sigmoid(gates[:, 3 * H:4 * H])
        c = f * c + i * g
        h = o * jnp.tanh(c)
    return h @ w_fc.T + b_fc


def init_params(key, input_dim, hidden_dim, output_dim):
    """Deterministic init matching PyTorch shapes (uniform +-1/sqrt(H))."""
    k = 1.0 / jnp.sqrt(jnp.float32(hidden_dim))
    keys = jax.random.split(key, 6)
    w_ih = jax.random.uniform(keys[0], (4 * hidden_dim, input_dim), jnp.float32, -k, k)
    w_hh = jax.random.uniform(keys[1], (4 * hidden_dim, hidden_dim), jnp.float32, -k, k)
    b_ih = jax.random.uniform(keys[2], (4 * hidden_dim,), jnp.float32, -k, k)
    b_hh = jax.random.uniform(keys[3], (4 * hidden_dim,), jnp.float32, -k, k)
    w_fc = jax.random.uniform(keys[4], (output_dim, hidden_dim), jnp.float32, -k, k)
    b_fc = jax.random.uniform(keys[5], (output_dim,), jnp.float32, -k, k)
    return (w_ih, w_hh, b_ih, b_hh, w_fc, b_fc)


if __name__ == "__main__":
    # Small shapes consistent with the module: batch=2, seq=8, input_dim=4,
    # hidden_dim=32, num_layers=1 (nn.LSTM default), output_dim=1.
    B, T, INPUT_DIM, HIDDEN_DIM, OUTPUT_DIM = 2, 8, 4, 32, 1

    key = jax.random.PRNGKey(0)
    kx, kp = jax.random.split(key)
    x = jax.random.normal(kx, (B, T, INPUT_DIM), jnp.float32)
    params = init_params(kp, INPUT_DIM, HIDDEN_DIM, OUTPUT_DIM)

    out = lstm_forward(x, params, hidden_dim=HIDDEN_DIM,
                       output_dim=OUTPUT_DIM, input_dim=INPUT_DIM)
    out = jax.block_until_ready(out)

    ref = _reference_forward(x, params, hidden_dim=HIDDEN_DIM, output_dim=OUTPUT_DIM)
    assert out.shape == (B, OUTPUT_DIM)
    assert jnp.allclose(out, ref, atol=1e-5, rtol=1e-5)

    print("KERNEL_OK")
</pallas_src>

<mosaic_0001>
module attributes {stable_mosaic.version = 11 : i64} {
  func.func @_lstm_kernel(%arg0: memref<64x4xf32, #tpu.memory_space<vmem>>, %arg1: memref<4x128xf32, #tpu.memory_space<vmem>>, %arg2: memref<1x128xf32, #tpu.memory_space<vmem>>, %arg3: memref<32x128xf32, #tpu.memory_space<vmem>>, %arg4: memref<32x128xf32, #tpu.memory_space<vmem>>, %arg5: memref<1x128xf32, #tpu.memory_space<vmem>>, %arg6: memref<8x128xf32, #tpu.memory_space<vmem>>, %arg7: memref<64x128xf32, #tpu.memory_space<vmem>>) attributes {dimension_semantics = [], scalar_prefetch = 0 : i64, scratch_operands = 1 : i64, tpu.core_type = #tpu.core_type<tc>} {
    %c0 = arith.constant 0 : index
    %c0_0 = arith.constant 0 : index
    %0 = vector.load %arg0[%c0, %c0_0] : memref<64x4xf32, #tpu.memory_space<vmem>>, vector<64x4xf32>
    %c0_1 = arith.constant 0 : index
    %c0_2 = arith.constant 0 : index
    %1 = vector.load %arg1[%c0_1, %c0_2] : memref<4x128xf32, #tpu.memory_space<vmem>>, vector<4x128xf32>
    %cst = arith.constant dense<0.000000e+00> : vector<64x128xf32>
    %2 = tpu.matmul %0, %1, %cst {dimension_numbers = #tpu.dot_dimension_numbers<[1], [0], [0], [1], [0, 0, 1, 1], [], []>} : vector<64x4xf32>, vector<4x128xf32>, vector<64x128xf32> -> vector<64x128xf32>
    %c0_3 = arith.constant 0 : index
    %c0_4 = arith.constant 0 : index
    %3 = vector.load %arg2[%c0_3, %c0_4] : memref<1x128xf32, #tpu.memory_space<vmem>>, vector<1x128xf32>
    %4 = vector.broadcast %3 : vector<1x128xf32> to vector<64x128xf32>
    %5 = arith.addf %2, %4 : vector<64x128xf32>
    %c0_5 = arith.constant 0 : index
    %c0_6 = arith.constant 0 : index
    %6 = vector.load %arg7[%c0_5, %c0_6] : memref<64x128xf32, #tpu.memory_space<vmem>>, vector<64x128xf32>
    tpu.vector_store %arg7[%c0_5, %c0_6], %5 {strides = array<i32>} : memref<64x128xf32, #tpu.memory_space<vmem>>, vector<64x128xf32>,
    %7 = tpu.iota {dimensions = array<i32: 1>} : vector<8x128xi32>
    %c64_i32 = arith.constant 64 : i32
    %8 = vector.broadcast %c64_i32 : i32 to vector<8x128xi32>
    %9 = arith.cmpi sge, %7, %8 : vector<8x128xi32>
    %c96_i32 = arith.constant 96 : i32
    %10 = vector.broadcast %c96_i32 : i32 to vector<8x128xi32>
    %11 = arith.cmpi slt, %7, %10 : vector<8x128xi32>
    %12 = arith.andi %9, %11 : vector<8x128xi1>
    %cst_7 = arith.constant 0.000000e+00 : f32
    %13 = vector.broadcast %cst_7 : f32 to vector<8x32xf32>
    %cst_8 = arith.constant 0.000000e+00 : f32
    %14 = vector.broadcast %cst_8 : f32 to vector<8x32xf32>
    %c0_9 = arith.constant 0 : index
    %c0_10 = arith.constant 0 : index
    %15 = vector.load %arg7[%c0_9, %c0_10] : memref<64x128xf32, #tpu.memory_space<vmem>>, vector<8x128xf32>
    %c0_11 = arith.constant 0 : index
    %c0_12 = arith.constant 0 : index
    %16 = vector.load %arg3[%c0_11, %c0_12] : memref<32x128xf32, #tpu.memory_space<vmem>>, vector<32x128xf32>
    %cst_13 = arith.constant dense<0.000000e+00> : vector<8x128xf32>
    %17 = tpu.matmul %13, %16, %cst_13 {dimension_numbers = #tpu.dot_dimension_numbers<[1], [0], [0], [1], [0, 0, 1, 1], [], []>} : vector<8x32xf32>, vector<32x128xf32>, vector<8x128xf32> -> vector<8x128xf32>
    %18 = arith.addf %15, %17 : vector<8x128xf32>
    %19 = math.tanh %18 : vector<8x128xf32>
    %20 = arith.negf %18 : vector<8x128xf32>
    %21 = math.exp %20 : vector<8x128xf32>
    %cst_14 = arith.constant 1.000000e+00 : f32
    %22 = vector.broadcast %cst_14 : f32 to vector<8x128xf32>
    %23 = arith.addf %22, %21 : vector<8x128xf32>
    %24 = arith.divf %22, %23 : vector<8x128xf32>
    %25 = arith.select %12, %19, %24 : vector<8x128xi1>, vector<8x128xf32>
    %26 = vector.extract_strided_slice %25 {offsets = [0, 0], sizes = [8, 32], strides = [1, 1]} : vector<8x128xf32> to vector<8x32xf32>
    %27 = vector.extract_strided_slice %25 {offsets = [0, 32], sizes = [8, 32], strides = [1, 1]} : vector<8x128xf32> to vector<8x32xf32>
    %28 = vector.extract_strided_slice %25 {offsets = [0, 64], sizes = [8, 32], strides = [1, 1]} : vector<8x128xf32> to vector<8x32xf32>
    %29 = vector.extract_strided_slice %25 {offsets = [0, 96], sizes = [8, 32], strides = [1, 1]} : vector<8x128xf32> to vector<8x32xf32>
    %30 = arith.mulf %27, %14 : vector<8x32xf32>
    %31 = arith.mulf %26, %28 : vector<8x32xf32>
    %32 = arith.addf %30, %31 : vector<8x32xf32>
    %33 = math.tanh %32 : vector<8x32xf32>
    %34 = arith.mulf %29, %33 : vector<8x32xf32>
    %c8 = arith.constant 8 : index
    %c0_15 = arith.constant 0 : index
    %35 = vector.load %arg7[%c8, %c0_15] : memref<64x128xf32, #tpu.memory_space<vmem>>, vector<8x128xf32>
    %c0_16 = arith.constant 0 : index
    %c0_17 = arith.constant 0 : index
    %36 = vector.load %arg3[%c0_16, %c0_17] : memref<32x128xf32, #tpu.memory_space<vmem>>, vector<32x128xf32>
    %cst_18 = arith.constant dense<0.000000e+00> : vector<8x128xf32>
    %37 = tpu.matmul %34, %36, %cst_18 {dimension_numbers = #tpu.dot_dimension_numbers<[1], [0], [0], [1], [0, 0, 1, 1], [], []>} : vector<8x32xf32>, vector<32x128xf32>, vector<8x128xf32> -> vector<8x128xf32>
    %38 = arith.addf %35, %37 : vector<8x128xf32>
    %39 = math.tanh %38 : vector<8x128xf32>
    %40 = arith.negf %38 : vector<8x128xf32>
    %41 = math.exp %40 : vector<8x128xf32>
    %cst_19 = arith.constant 1.000000e+00 : f32
    %42 = vector.broadcast %cst_19 : f32 to vector<8x128xf32>
    %43 = arith.addf %42, %41 : vector<8x128xf32>
    %44 = arith.divf %42, %43 : vector<8x128xf32>
    %45 = arith.select %12, %39, %44 : vector<8x128xi1>, vector<8x128xf32>
    %46 = vector.extract_strided_slice %45 {offsets = [0, 0], sizes = [8, 32], strides = [1, 1]} : vector<8x128xf32> to vector<8x32xf32>
    %47 = vector.extract_strided_slice %45 {offsets = [0, 32], sizes = [8, 32], strides = [1, 1]} : vector<8x128xf32> to vector<8x32xf32>
    %48 = vector.extract_strided_slice %45 {offsets = [0, 64], sizes = [8, 32], strides = [1, 1]} : vector<8x128xf32> to vector<8x32xf32>
    %49 = vector.extract_strided_slice %45 {offsets = [0, 96], sizes = [8, 32], strides = [1, 1]} : vector<8x128xf32> to vector<8x32xf32>
    %50 = arith.mulf %47, %32 : vector<8x32xf32>
    %51 = arith.mulf %46, %48 : vector<8x32xf32>
    %52 = arith.addf %50, %51 : vector<8x32xf32>
    %53 = math.tanh %52 : vector<8x32xf32>
    %54 = arith.mulf %49, %53 : vector<8x32xf32>
    %c16 = arith.constant 16 : index
    %c0_20 = arith.constant 0 : index
    %55 = vector.load %arg7[%c16, %c0_20] : memref<64x128xf32, #tpu.memory_space<vmem>>, vector<8x128xf32>
    %c0_21 = arith.constant 0 : index
    %c0_22 = arith.constant 0 : index
    %56 = vector.load %arg3[%c0_21, %c0_22] : memref<32x128xf32, #tpu.memory_space<vmem>>, vector<32x128xf32>
    %cst_23 = arith.constant dense<0.000000e+00> : vector<8x128xf32>
    %57 = tpu.matmul %54, %56, %cst_23 {dimension_numbers = #tpu.dot_dimension_numbers<[1], [0], [0], [1], [0, 0, 1, 1], [], []>} : vector<8x32xf32>, vector<32x128xf32>, vector<8x128xf32> -> vector<8x128xf32>
    %58 = arith.addf %55, %57 : vector<8x128xf32>
    %59 = math.tanh %58 : vector<8x128xf32>
    %60 = arith.negf %58 : vector<8x128xf32>
    %61 = math.exp %60 : vector<8x128xf32>
    %cst_24 = arith.constant 1.000000e+00 : f32
    %62 = vector.broadcast %cst_24 : f32 to vector<8x128xf32>
    %63 = arith.addf %62, %61 : vector<8x128xf32>
    %64 = arith.divf %62, %63 : vector<8x128xf32>
    %65 = arith.select %12, %59, %64 : vector<8x128xi1>, vector<8x128xf32>
    %66 = vector.extract_strided_slice %65 {offsets = [0, 0], sizes = [8, 32], strides = [1, 1]} : vector<8x128xf32> to vector<8x32xf32>
    %67 = vector.extract_strided_slice %65 {offsets = [0, 32], sizes = [8, 32], strides = [1, 1]} : vector<8x128xf32> to vector<8x32xf32>
    %68 = vector.extract_strided_slice %65 {offsets = [0, 64], sizes = [8, 32], strides = [1, 1]} : vector<8x128xf32> to vector<8x32xf32>
    %69 = vector.extract_strided_slice %65 {offsets = [0, 96], sizes = [8, 32], strides = [1, 1]} : vector<8x128xf32> to vector<8x32xf32>
    %70 = arith.mulf %67, %52 : vector<8x32xf32>
    %71 = arith.mulf %66, %68 : vector<8x32xf32>
    %72 = arith.addf %70, %71 : vector<8x32xf32>
    %73 = math.tanh %72 : vector<8x32xf32>
    %74 = arith.mulf %69, %73 : vector<8x32xf32>
    %c24 = arith.constant 24 : index
    %c0_25 = arith.constant 0 : index
    %75 = vector.load %arg7[%c24, %c0_25] : memref<64x128xf32, #tpu.memory_space<vmem>>, vector<8x128xf32>
    %c0_26 = arith.constant 0 : index
    %c0_27 = arith.constant 0 : index
    %76 = vector.load %arg3[%c0_26, %c0_27] : memref<32x128xf32, #tpu.memory_space<vmem>>, vector<32x128xf32>
    %cst_28 = arith.constant dense<0.000000e+00> : vector<8x128xf32>
    %77 = tpu.matmul %74, %76, %cst_28 {dimension_numbers = #tpu.dot_dimension_numbers<[1], [0], [0], [1], [0, 0, 1, 1], [], []>} : vector<8x32xf32>, vector<32x128xf32>, vector<8x128xf32> -> vector<8x128xf32>
    %78 = arith.addf %75, %77 : vector<8x128xf32>
    %79 = math.tanh %78 : vector<8x128xf32>
    %80 = arith.negf %78 : vector<8x128xf32>
    %81 = math.exp %80 : vector<8x128xf32>
    %cst_29 = arith.constant 1.000000e+00 : f32
    %82 = vector.broadcast %cst_29 : f32 to vector<8x128xf32>
    %83 = arith.addf %82, %81 : vector<8x128xf32>
    %84 = arith.divf %82, %83 : vector<8x128xf32>
    %85 = arith.select %12, %79, %84 : vector<8x128xi1>, vector<8x128xf32>
    %86 = vector.extract_strided_slice %85 {offsets = [0, 0], sizes = [8, 32], strides = [1, 1]} : vector<8x128xf32> to vector<8x32xf32>
    %87 = vector.extract_strided_slice %85 {offsets = [0, 32], sizes = [8, 32], strides = [1, 1]} : vector<8x128xf32> to vector<8x32xf32>
    %88 = vector.extract_strided_slice %85 {offsets = [0, 64], sizes = [8, 32], strides = [1, 1]} : vector<8x128xf32> to vector<8x32xf32>
    %89 = vector.extract_strided_slice %85 {offsets = [0, 96], sizes = [8, 32], strides = [1, 1]} : vector<8x128xf32> to vector<8x32xf32>
    %90 = arith.mulf %87, %72 : vector<8x32xf32>
    %91 = arith.mulf %86, %88 : vector<8x32xf32>
    %92 = arith.addf %90, %91 : vector<8x32xf32>
    %93 = math.tanh %92 : vector<8x32xf32>
    %94 = arith.mulf %89, %93 : vector<8x32xf32>
    %c32 = arith.constant 32 : index
    %c0_30 = arith.constant 0 : index
    %95 = vector.load %arg7[%c32, %c0_30] : memref<64x128xf32, #tpu.memory_space<vmem>>, vector<8x128xf32>
    %c0_31 = arith.constant 0 : index
    %c0_32 = arith.constant 0 : index
    %96 = vector.load %arg3[%c0_31, %c0_32] : memref<32x128xf32, #tpu.memory_space<vmem>>, vector<32x128xf32>
    %cst_33 = arith.constant dense<0.000000e+00> : vector<8x128xf32>
    %97 = tpu.matmul %94, %96, %cst_33 {dimension_numbers = #tpu.dot_dimension_numbers<[1], [0], [0], [1], [0, 0, 1, 1], [], []>} : vector<8x32xf32>, vector<32x128xf32>, vector<8x128xf32> -> vector<8x128xf32>
    %98 = arith.addf %95, %97 : vector<8x128xf32>
    %99 = math.tanh %98 : vector<8x128xf32>
    %100 = arith.negf %98 : vector<8x128xf32>
    %101 = math.exp %100 : vector<8x128xf32>
    %cst_34 = arith.constant 1.000000e+00 : f32
    %102 = vector.broadcast %cst_34 : f32 to vector<8x128xf32>
    %103 = arith.addf %102, %101 : vector<8x128xf32>
    %104 = arith.divf %102, %103 : vector<8x128xf32>
    %105 = arith.select %12, %99, %104 : vector<8x128xi1>, vector<8x128xf32>
    %106 = vector.extract_strided_slice %105 {offsets = [0, 0], sizes = [8, 32], strides = [1, 1]} : vector<8x128xf32> to vector<8x32xf32>
    %107 = vector.extract_strided_slice %105 {offsets = [0, 32], sizes = [8, 32], strides = [1, 1]} : vector<8x128xf32> to vector<8x32xf32>
    %108 = vector.extract_strided_slice %105 {offsets = [0, 64], sizes = [8, 32], strides = [1, 1]} : vector<8x128xf32> to vector<8x32xf32>
    %109 = vector.extract_strided_slice %105 {offsets = [0, 96], sizes = [8, 32], strides = [1, 1]} : vector<8x128xf32> to vector<8x32xf32>
    %110 = arith.mulf %107, %92 : vector<8x32xf32>
    %111 = arith.mulf %106, %108 : vector<8x32xf32>
    %112 = arith.addf %110, %111 : vector<8x32xf32>
    %113 = math.tanh %112 : vector<8x32xf32>
    %114 = arith.mulf %109, %113 : vector<8x32xf32>
    %c40 = arith.constant 40 : index
    %c0_35 = arith.constant 0 : index
    %115 = vector.load %arg7[%c40, %c0_35] : memref<64x128xf32, #tpu.memory_space<vmem>>, vector<8x128xf32>
    %c0_36 = arith.constant 0 : index
    %c0_37 = arith.constant 0 : index
    %116 = vector.load %arg3[%c0_36, %c0_37] : memref<32x128xf32, #tpu.memory_space<vmem>>, vector<32x128xf32>
    %cst_38 = arith.constant dense<0.000000e+00> : vector<8x128xf32>
    %117 = tpu.matmul %114, %116, %cst_38 {dimension_numbers = #tpu.dot_dimension_numbers<[1], [0], [0], [1], [0, 0, 1, 1], [], []>} : vector<8x32xf32>, vector<32x128xf32>, vector<8x128xf32> -> vector<8x128xf32>
    %118 = arith.addf %115, %117 : vector<8x128xf32>
    %119 = math.tanh %118 : vector<8x128xf32>
    %120 = arith.negf %118 : vector<8x128xf32>
    %121 = math.exp %120 : vector<8x128xf32>
    %cst_39 = arith.constant 1.000000e+00 : f32
    %122 = vector.broadcast %cst_39 : f32 to vector<8x128xf32>
    %123 = arith.addf %122, %121 : vector<8x128xf32>
    %124 = arith.divf %122, %123 : vector<8x128xf32>
    %125 = arith.select %12, %119, %124 : vector<8x128xi1>, vector<8x128xf32>
    %126 = vector.extract_strided_slice %125 {offsets = [0, 0], sizes = [8, 32], strides = [1, 1]} : vector<8x128xf32> to vector<8x32xf32>
    %127 = vector.extract_strided_slice %125 {offsets = [0, 32], sizes = [8, 32], strides = [1, 1]} : vector<8x128xf32> to vector<8x32xf32>
    %128 = vector.extract_strided_slice %125 {offsets = [0, 64], sizes = [8, 32], strides = [1, 1]} : vector<8x128xf32> to vector<8x32xf32>
    %129 = vector.extract_strided_slice %125 {offsets = [0, 96], sizes = [8, 32], strides = [1, 1]} : vector<8x128xf32> to vector<8x32xf32>
    %130 = arith.mulf %127, %112 : vector<8x32xf32>
    %131 = arith.mulf %126, %128 : vector<8x32xf32>
    %132 = arith.addf %130, %131 : vector<8x32xf32>
    %133 = math.tanh %132 : vector<8x32xf32>
    %134 = arith.mulf %129, %133 : vector<8x32xf32>
    %c48 = arith.constant 48 : index
    %c0_40 = arith.constant 0 : index
    %135 = vector.load %arg7[%c48, %c0_40] : memref<64x128xf32, #tpu.memory_space<vmem>>, vector<8x128xf32>
    %c0_41 = arith.constant 0 : index
    %c0_42 = arith.constant 0 : index
    %136 = vector.load %arg3[%c0_41, %c0_42] : memref<32x128xf32, #tpu.memory_space<vmem>>, vector<32x128xf32>
    %cst_43 = arith.constant dense<0.000000e+00> : vector<8x128xf32>
    %137 = tpu.matmul %134, %136, %cst_43 {dimension_numbers = #tpu.dot_dimension_numbers<[1], [0], [0], [1], [0, 0, 1, 1], [], []>} : vector<8x32xf32>, vector<32x128xf32>, vector<8x128xf32> -> vector<8x128xf32>
    %138 = arith.addf %135, %137 : vector<8x128xf32>
    %139 = math.tanh %138 : vector<8x128xf32>
    %140 = arith.negf %138 : vector<8x128xf32>
    %141 = math.exp %140 : vector<8x128xf32>
    %cst_44 = arith.constant 1.000000e+00 : f32
    %142 = vector.broadcast %cst_44 : f32 to vector<8x128xf32>
    %143 = arith.addf %142, %141 : vector<8x128xf32>
    %144 = arith.divf %142, %143 : vector<8x128xf32>
    %145 = arith.select %12, %139, %144 : vector<8x128xi1>, vector<8x128xf32>
    %146 = vector.extract_strided_slice %145 {offsets = [0, 0], sizes = [8, 32], strides = [1, 1]} : vector<8x128xf32> to vector<8x32xf32>
    %147 = vector.extract_strided_slice %145 {offsets = [0, 32], sizes = [8, 32], strides = [1, 1]} : vector<8x128xf32> to vector<8x32xf32>
    %148 = vector.extract_strided_slice %145 {offsets = [0, 64], sizes = [8, 32], strides = [1, 1]} : vector<8x128xf32> to vector<8x32xf32>
    %149 = vector.extract_strided_slice %145 {offsets = [0, 96], sizes = [8, 32], strides = [1, 1]} : vector<8x128xf32> to vector<8x32xf32>
    %150 = arith.mulf %147, %132 : vector<8x32xf32>
    %151 = arith.mulf %146, %148 : vector<8x32xf32>
    %152 = arith.addf %150, %151 : vector<8x32xf32>
    %153 = math.tanh %152 : vector<8x32xf32>
    %154 = arith.mulf %149, %153 : vector<8x32xf32>
    %c56 = arith.constant 56 : index
    %c0_45 = arith.constant 0 : index
    %155 = vector.load %arg7[%c56, %c0_45] : memref<64x128xf32, #tpu.memory_space<vmem>>, vector<8x128xf32>
    %c0_46 = arith.constant 0 : index
    %c0_47 = arith.constant 0 : index
    %156 = vector.load %arg3[%c0_46, %c0_47] : memref<32x128xf32, #tpu.memory_space<vmem>>, vector<32x128xf32>
    %cst_48 = arith.constant dense<0.000000e+00> : vector<8x128xf32>
    %157 = tpu.matmul %154, %156, %cst_48 {dimension_numbers = #tpu.dot_dimension_numbers<[1], [0], [0], [1], [0, 0, 1, 1], [], []>} : vector<8x32xf32>, vector<32x128xf32>, vector<8x128xf32> -> vector<8x128xf32>
    %158 = arith.addf %155, %157 : vector<8x128xf32>
    %159 = math.tanh %158 : vector<8x128xf32>
    %160 = arith.negf %158 : vector<8x128xf32>
    %161 = math.exp %160 : vector<8x128xf32>
    %cst_49 = arith.constant 1.000000e+00 : f32
    %162 = vector.broadcast %cst_49 : f32 to vector<8x128xf32>
    %163 = arith.addf %162, %161 : vector<8x128xf32>
    %164 = arith.divf %162, %163 : vector<8x128xf32>
    %165 = arith.select %12, %159, %164 : vector<8x128xi1>, vector<8x128xf32>
    %166 = vector.extract_strided_slice %165 {offsets = [0, 0], sizes = [8, 32], strides = [1, 1]} : vector<8x128xf32> to vector<8x32xf32>
    %167 = vector.extract_strided_slice %165 {offsets = [0, 32], sizes = [8, 32], strides = [1, 1]} : vector<8x128xf32> to vector<8x32xf32>
    %168 = vector.extract_strided_slice %165 {offsets = [0, 64], sizes = [8, 32], strides = [1, 1]} : vector<8x128xf32> to vector<8x32xf32>
    %169 = vector.extract_strided_slice %165 {offsets = [0, 96], sizes = [8, 32], strides = [1, 1]} : vector<8x128xf32> to vector<8x32xf32>
    %170 = arith.mulf %167, %152 : vector<8x32xf32>
    %171 = arith.mulf %166, %168 : vector<8x32xf32>
    %172 = arith.addf %170, %171 : vector<8x32xf32>
    %173 = math.tanh %172 : vector<8x32xf32>
    %174 = arith.mulf %169, %173 : vector<8x32xf32>
    %c0_50 = arith.constant 0 : index
    %c0_51 = arith.constant 0 : index
    %175 = vector.load %arg4[%c0_50, %c0_51] : memref<32x128xf32, #tpu.memory_space<vmem>>, vector<32x128xf32>
    %cst_52 = arith.constant dense<0.000000e+00> : vector<8x128xf32>
    %176 = tpu.matmul %174, %175, %cst_52 {dimension_numbers = #tpu.dot_dimension_numbers<[1], [0], [0], [1], [0, 0, 1, 1], [], []>} : vector<8x32xf32>, vector<32x128xf32>, vector<8x128xf32> -> vector<8x128xf32>
    %c0_53 = arith.constant 0 : index
    %c0_54 = arith.constant 0 : index
    %177 = vector.load %arg5[%c0_53, %c0_54] : memref<1x128xf32, #tpu.memory_space<vmem>>, vector<1x128xf32>
    %178 = vector.broadcast %177 : vector<1x128xf32> to vector<8x128xf32>
    %179 = arith.addf %176, %178 : vector<8x128xf32>
    %c0_55 = arith.constant 0 : index
    %c0_56 = arith.constant 0 : index
    %180 = vector.load %arg6[%c0_55, %c0_56] : memref<8x128xf32, #tpu.memory_space<vmem>>, vector<8x128xf32>
    tpu.vector_store %arg6[%c0_55, %c0_56], %179 {strides = array<i32>} : memref<8x128xf32, #tpu.memory_space<vmem>>, vector<8x128xf32>,
    return
  }
}

</mosaic_0001>

<bundles_post_ra>
// kernel: tpu_custom_call.1
= control target key start
LH: loop header
LB: loop body
LE: loop exit
PB: predicated region body
PF: predicated region fallthrough
CT: control target
= control target key end

     0   :  { %vm65_vm0 = vcmask 1043456   ;;  %v1449_v3 = vmov 0.0|0.0   ;;  %vm40_vm1 = vcmask 31744   ;;  %s1706_s0 = inlined_call_operand.vmem [shape: f32[64,4], index: 0, kind: input, shape index: {}]   ;;  %s1707_s1 = inlined_call_operand.vmem [shape: f32[4,128], index: 1, kind: input, shape index: {}]   ;;  %s1708_s2 = inlined_call_operand.vmem [shape: f32[1,128], index: 2, kind: input, shape index: {}]   ;;  %s1709_s3 = inlined_call_operand.vmem [shape: f32[32,128], index: 3, kind: input, shape index: {}]   ;;  %s1710_s4 = inlined_call_operand.vmem [shape: f32[32,128], index: 4, kind: input, shape index: {}]   ;;  %s1711_s5 = inlined_call_operand.vmem [shape: f32[1,128], index: 5, kind: input, shape index: {}]   ;;  %s1712_s6 = inlined_call_operand.hbm [shape: f32[8,128], index: 6, kind: output, shape index: {}]  }
   0x1   :  { %v188_v0 = vld [vmem:[%s1709_s3] sm:$0xff]  ;;  %v189_v1 = vld [vmem:[%s1709_s3 + $0x8] sm:$0xff]  ;;  %1301 = vmatprep.subr.bf16.mxu1 %v1449_v3  ;;  %v190_v7 = vld [vmem:[%s1709_s3 + $0x10] sm:$0xff] }
   0x2   :  { %v32_v2 = vld [vmem:[%s1707_s1] sm:$0xf]  ;;  %v1500_v4 = vpack.c.bf16 %v189_v1, %v188_v0  ;;  %v25_v6 = vld [vmem:[%s1706_s0 + $0x8] sm:$0xff]  ;;  %v191_v8 = vld [vmem:[%s1709_s3 + $0x18] sm:$0xff] }
   0x3   :  { %1188 = vmatprep.subr.msk.mxu0 %vm65_vm0, %v32_v2  ;;  %v24_v5 = vld [vmem:[%s1706_s0] sm:$0xff] }
   0x4   :  { %1189 = vmatpush3.msk.msra.mxu0 %vm65_vm0, %v32_v2  ;;  %1190 = vmatprep.mubr.msk.f32.mxu0 %vm40_vm1, %v24_v5 }
   0x5   :  { %11 = vsyncpa [#allocation4], 0  ;;  %1303 = vmatpush3.bf16.msra.mxu1 %v1500_v4  ;;  %1191 = vmatmul.mubr.msk.f32.vlgmr.msra.gmra.mrb[0].mxu0 %vm40_vm1, %v25_v6  ;;  %v1517_v9 = vpack.c.bf16 %v191_v8, %v190_v7  ;;  %vm1450_vm2 = vmmov 0   ;;  %v1451_v10 = vmov 0.0   ;;  %v1539_v12 = vld [vmem:[%s1708_s2] ss:$0 sm:$0xff]  ;;  %v182_v20 = vlaneseq }
   0x6   :  { %1304 = vmatprep.subr.bf16.mxu1 %v1449_v3  ;;  %1210 = vmatprep.mubr.msk.f32.mxu1 %vm1450_vm2, %v1451_v10  ;;  %s1452_s2 = smov 64   ;;  %s1453_s11 = smov 32   ;;  %vm192_vm6 = vcmask 261120   ;;  %v26_v51 = vld [vmem:[%s1706_s0 + $0x10] sm:$0xff]  ;;  %v27_v52 = vld [vmem:[%s1706_s0 + $0x18] sm:$0xff]  ;;  %v28_v53 = vld [vmem:[%s1706_s0 + $0x20] sm:$0xff] }
   0x7   :  { %1313 = vmatprep.subr.bf16.mxu0 %v1449_v3  ;;  %v183_v22 = vand.u32 127, %v182_v20  ;;  %1193 = vmatprep.mubr.msk.f32.mxu0 %vm40_vm1, %v26_v51  ;;  %v29_v54 = vld [vmem:[%s1706_s0 + $0x28] sm:$0xff]  ;;  %v30_v55 = vld [vmem:[%s1706_s0 + $0x30] sm:$0xff]  ;;  %v31_v56 = vld [vmem:[%s1706_s0 + $0x38] sm:$0xff] }
   0x8   :  { %1315 = vmatpush3.bf16.msra.mxu0 %v1500_v4  ;;  %v1008_v23 = vld [vmem:[%s1710_s4 + $0x10] sm:$0xff] }
   0x9   :  { %1306 = vmatpush3.bf16.msra.mxu1 %v1517_v9  ;;  %1316 = vmatprep.subr.bf16.mxu0 %v1449_v3  ;;  %vm184_vm3 = vcmp.ge.s32.totalorder %v183_v22, 64  ;;  %vm185_vm4 = vcmp.lt.s32.totalorder %v183_v22, 96 }
   0xa   :  { %1307 = vmatprep.subr.bf16.mxu1 %v1449_v3  ;;  %vm1542_vm5 = vmand %vm184_vm3, %vm185_vm4  ;;  %1194 = vmatmul.mubr.msk.f32.gmra.mrb[2].mxu0 %vm40_vm1, %v27_v52 }
   0xb   :  { %1196 = vmatprep.mubr.msk.f32.mxu0 %vm40_vm1, %v28_v53 }
   0xc   :  { %1211 = vmatmul.mubr.f32.vlgmr.msra.gmra.mrb[0].mxu1 %v1451_v10  ;;  %1318 = vmatpush3.bf16.msra.mxu0 %v1517_v9 }
   0xd   :  { %1309 = vmatpush3.bf16.msra.mxu1 %v1500_v4  ;;  %1221 = vmatprep.mubr.msk.f32.mxu1 %vm1450_vm2, %v1451_v10 }
   0xe   :  { %1310 = vmatprep.subr.bf16.mxu1 %v1449_v3  ;;  %1325 = vmatprep.subr.bf16.mxu0 %v1449_v3 }
   0xf   :  { %1197 = vmatmul.mubr.msk.f32.gmra.mrb[4].mxu0 %vm40_vm1, %v29_v54 }
  0x10   :  { %1199 = vmatprep.mubr.msk.f32.mxu0 %vm40_vm1, %v30_v55 }
  0x11   :  { %1312 = vmatpush3.bf16.msra.mxu1 %v1517_v9 }
  0x12   :  { %1319 = vmatprep.subr.bf16.mxu1 %v1449_v3 }
  0x13   :  { %1200 = vmatmul.mubr.msk.f32.gmra.mrb[6].mxu0 %vm40_vm1, %v31_v56 }
  0x14   :  { %1232 = vmatprep.mubr.msk.f32.mxu0 %vm1450_vm2, %v1451_v10 }
  0xd8   :  { %v1192_v11 = vpop.f32.mrb[0].mxu0 }
  0xd9   :  { %v135_v13 = vpop.f32.mrb[1].mxu0  ;;  %v141_v36 = vadd.f32 %v1192_v11, %v1539_v12 }
  0xda   :  { %v136_v14 = vadd.f32 %v1539_v12, %v135_v13 }
  0xdd   :  { %v1195_v60 = vpop.f32.mrb[2].mxu0 }
  0xde   :  { %v145_v61 = vpop.f32.mrb[3].mxu0 }
  0xdf   :  { %v262_v15 = vpop.f32.mrb[0].mxu1  ;;  %v146_v5 = vadd.f32 %v1539_v12, %v145_v61 }
  0xe0   :  { %v266_v16 = vadd.f32 %v262_v15, %v136_v14  ;;  %v1212_v17 = vpop.f32.mrb[1].mxu1 }
  0xe2   :  { %v1117_v18 = vmul.f32 -1.442695, %v266_v16  ;;  %v1592_v62 = vpop.f32.mrb[4].mxu0 }
  0xe3   :  { %v1594_v63 = vpop.f32.mrb[5].mxu0 }
  0xe4   :  { %1361 = vpow2.f32 %v1117_v18 }
  0xe5   :  { %1363 = vtanh.f32 %v266_v16 }
  0xe6   :  { %v1596_v0 = vpop.f32.mrb[6].mxu0 }
  0xe7   :  { %v1598_v1 = vpop.f32.mrb[7].mxu0 }
  0xee   :  { %v1362_v19 = vpop.eup %1361 }
  0xef   :  { %v271_v21 = vadd.f32 1.0, %v1362_v19  ;;  %v1364_v24 = vpop.eup %1363 }
  0xf1   :  { %1365 = vrcp.f32 %v271_v21 }
  0xfb   :  { %v1366_v25 = vpop.eup %1365 }
  0xfc   :  { %v274_v26 = vsel %vm1542_vm5, %v1364_v24, %v1366_v25 }
  0xfd   :  { %277 = vrot.lane.b32.xlu0 %v274_v26, %s1452_s2  ;;  %v275_v29 = vmul.f32 0.0, %v274_v26 }
 0x16f   :  { %v278_v27 = vpop.permute.xlu0 %277 }
 0x170   :  { %v280_v28 = vmul.f32 %v278_v27, %v274_v26 }
 0x172   :  { %282 = vrot.lane.b32.xlu0 %v280_v28, %s1453_s11  ;;  %v151_v28 = vadd.f32 %v1195_v60, %v1539_v12 }
 0x1e4   :  { %v283_v30 = vpop.permute.xlu0 %282 }
 0x1e5   :  { %v285_v31 = vadd.f32 %v283_v30, %v275_v29 }
 0x1e7   :  { %1367 = vtanh.f32 %v285_v31 }
 0x1f1   :  { %v1368_v32 = vpop.eup %1367 }
 0x1f2   :  { %288 = vrot.lane.b32.xlu1 %v1368_v32, %s1452_s2 }
 0x264   :  { %v289_v33 = vpop.permute.xlu1 %288 }
 0x265   :  { %v291_v34 = vmul.f32 %v289_v33, %v274_v26 }
 0x267   :  { %294 = vrot.lane.b32.xlu1 %v291_v34, %s1453_s11 }
 0x2d9   :  { %v295_v35 = vpop.permute.xlu1 %294 }
 0x2da   :  { %1222 = vmatmul.mubr.msk.f32.vlgmr.msra.gmra.mrb[2].mxu1 %vm192_vm6, %v295_v35 }
 0x2db   :  { %1321 = vmatpush3.bf16.msra.mxu1 %v1500_v4  ;;  %1243 = vmatprep.mubr.msk.f32.mxu1 %vm1450_vm2, %v1451_v10 }
 0x2dc   :  { %1322 = vmatprep.subr.bf16.mxu1 %v1449_v3 }
 0x2df   :  { %1324 = vmatpush3.bf16.msra.mxu1 %v1517_v9 }
 0x2e0   :  { %1331 = vmatprep.subr.bf16.mxu1 %v1449_v3 }
 0x3ad   :  { %v364_v37 = vpop.f32.mrb[2].mxu1 }
 0x3ae   :  { %v368_v38 = vadd.f32 %v364_v37, %v141_v36  ;;  %v1223_v39 = vpop.f32.mrb[3].mxu1 }
 0x3b0   :  { %v1119_v40 = vmul.f32 -1.442695, %v368_v38 }
 0x3b2   :  { %1369 = vpow2.f32 %v1119_v40 }
 0x3b3   :  { %1371 = vtanh.f32 %v368_v38 }
 0x3bc   :  { %v1370_v41 = vpop.eup %1369 }
 0x3bd   :  { %v373_v42 = vadd.f32 1.0, %v1370_v41  ;;  %v1372_v43 = vpop.eup %1371 }
 0x3bf   :  { %1373 = vrcp.f32 %v373_v42 }
 0x3c9   :  { %v1374_v44 = vpop.eup %1373 }
 0x3ca   :  { %v376_v45 = vsel %vm1542_vm5, %v1372_v43, %v1374_v44 }
 0x3cb   :  { %379 = vrot.lane.b32.xlu0 %v376_v45, %s1452_s2  ;;  %v377_v48 = vmul.f32 %v376_v45, %v285_v31 }
 0x43d   :  { %v380_v46 = vpop.permute.xlu0 %379 }
 0x43e   :  { %v382_v47 = vmul.f32 %v380_v46, %v376_v45 }
 0x440   :  { %384 = vrot.lane.b32.xlu1 %v382_v47, %s1453_s11  ;;  %v156_v47 = vadd.f32 %v1539_v12, %v1594_v63 }
 0x4b2   :  { %v385_v49 = vpop.permute.xlu1 %384 }
 0x4b3   :  { %v387_v50 = vadd.f32 %v385_v49, %v377_v48 }
 0x4b5   :  { %1375 = vtanh.f32 %v387_v50 }
 0x4bf   :  { %v1376_v57 = vpop.eup %1375 }
 0x4c0   :  { %390 = vrot.lane.b32.xlu0 %v1376_v57, %s1452_s2 }
 0x532   :  { %v391_v58 = vpop.permute.xlu0 %390 }
 0x533   :  { %v393_v59 = vmul.f32 %v391_v58, %v376_v45 }
 0x535   :  { %396 = vrot.lane.b32.xlu1 %v393_v59, %s1453_s11 }
 0x5a7   :  { %v397_v2 = vpop.permute.xlu1 %396 }
 0x5a8   :  { %1233 = vmatmul.mubr.msk.f32.vlgmr.msra.gmra.mrb[8].mxu0 %vm192_vm6, %v397_v2 }
 0x5a9   :  { %1327 = vmatpush3.bf16.msra.mxu0 %v1500_v4  ;;  %1254 = vmatprep.mubr.msk.f32.mxu0 %vm1450_vm2, %v1451_v10 }
 0x5aa   :  { %1328 = vmatprep.subr.bf16.mxu0 %v1449_v3 }
 0x5ad   :  { %1330 = vmatpush3.bf16.msra.mxu0 %v1517_v9 }
 0x5ae   :  { %1337 = vmatprep.subr.bf16.mxu0 %v1449_v3 }
 0x67b   :  { %v466_v6 = vpop.f32.mrb[8].mxu0 }
 0x67c   :  { %v470_v7 = vadd.f32 %v466_v6, %v146_v5  ;;  %v1234_v8 = vpop.f32.mrb[9].mxu0 }
 0x67e   :  { %v1121_v11 = vmul.f32 -1.442695, %v470_v7 }
 0x680   :  { %1377 = vpow2.f32 %v1121_v11 }
 0x681   :  { %1379 = vtanh.f32 %v470_v7  ;;  %v161_v7 = vadd.f32 %v1592_v62, %v1539_v12 }
 0x68a   :  { %v1378_v13 = vpop.eup %1377 }
 0x68b   :  { %v475_v14 = vadd.f32 1.0, %v1378_v13  ;;  %v1380_v15 = vpop.eup %1379 }
 0x68d   :  { %1381 = vrcp.f32 %v475_v14 }
 0x697   :  { %v1382_v16 = vpop.eup %1381 }
 0x698   :  { %v478_v17 = vsel %vm1542_vm5, %v1380_v15, %v1382_v16 }
 0x699   :  { %481 = vrot.lane.b32.xlu0 %v478_v17, %s1452_s2  ;;  %v479_v20 = vmul.f32 %v478_v17, %v387_v50 }
 0x70b   :  { %v482_v18 = vpop.permute.xlu0 %481 }
 0x70c   :  { %v484_v19 = vmul.f32 %v482_v18, %v478_v17 }
 0x70e   :  { %486 = vrot.lane.b32.xlu1 %v484_v19, %s1453_s11 }
 0x780   :  { %v487_v21 = vpop.permute.xlu1 %486 }
 0x781   :  { %v489_v22 = vadd.f32 %v487_v21, %v479_v20 }
 0x783   :  { %1383 = vtanh.f32 %v489_v22 }
 0x78d   :  { %v1384_v24 = vpop.eup %1383 }
 0x78e   :  { %492 = vrot.lane.b32.xlu0 %v1384_v24, %s1452_s2 }
 0x800   :  { %v493_v25 = vpop.permute.xlu0 %492 }
 0x801   :  { %v495_v26 = vmul.f32 %v493_v25, %v478_v17 }
 0x803   :  { %498 = vrot.lane.b32.xlu1 %v495_v26, %s1453_s11 }
 0x875   :  { %v499_v27 = vpop.permute.xlu1 %498 }
 0x876   :  { %1244 = vmatmul.mubr.msk.f32.vlgmr.msra.gmra.mrb[4].mxu1 %vm192_vm6, %v499_v27  ;;  %v166_v27 = vadd.f32 %v1539_v12, %v1598_v1 }
 0x877   :  { %1333 = vmatpush3.bf16.msra.mxu1 %v1500_v4  ;;  %1265 = vmatprep.mubr.msk.f32.mxu1 %vm1450_vm2, %v1451_v10 }
 0x878   :  { %1334 = vmatprep.subr.bf16.mxu1 %v1449_v3 }
 0x87b   :  { %1336 = vmatpush3.bf16.msra.mxu1 %v1517_v9 }
 0x87c   :  { %1343 = vmatprep.subr.bf16.mxu1 %v1449_v3 }
 0x949   :  { %v568_v29 = vpop.f32.mrb[4].mxu1 }
 0x94a   :  { %v572_v30 = vadd.f32 %v568_v29, %v151_v28  ;;  %v1245_v31 = vpop.f32.mrb[5].mxu1 }
 0x94c   :  { %v1123_v32 = vmul.f32 -1.442695, %v572_v30 }
 0x94e   :  { %1385 = vpow2.f32 %v1123_v32 }
 0x94f   :  { %1387 = vtanh.f32 %v572_v30 }
 0x958   :  { %v1386_v33 = vpop.eup %1385 }
 0x959   :  { %v577_v34 = vadd.f32 1.0, %v1386_v33  ;;  %v1388_v35 = vpop.eup %1387 }
 0x95b   :  { %1389 = vrcp.f32 %v577_v34 }
 0x965   :  { %v1390_v36 = vpop.eup %1389 }
 0x966   :  { %v580_v37 = vsel %vm1542_vm5, %v1388_v35, %v1390_v36 }
 0x967   :  { %583 = vrot.lane.b32.xlu0 %v580_v37, %s1452_s2  ;;  %v581_v40 = vmul.f32 %v580_v37, %v489_v22 }
 0x9d9   :  { %v584_v38 = vpop.permute.xlu0 %583 }
 0x9da   :  { %v586_v39 = vmul.f32 %v584_v38, %v580_v37 }
 0x9dc   :  { %588 = vrot.lane.b32.xlu1 %v586_v39, %s1453_s11 }
 0xa4e   :  { %v589_v41 = vpop.permute.xlu1 %588 }
 0xa4f   :  { %v591_v42 = vadd.f32 %v589_v41, %v581_v40 }
 0xa51   :  { %1391 = vtanh.f32 %v591_v42 }
 0xa5b   :  { %v1392_v43 = vpop.eup %1391 }
 0xa5c   :  { %594 = vrot.lane.b32.xlu0 %v1392_v43, %s1452_s2 }
 0xace   :  { %v595_v44 = vpop.permute.xlu0 %594 }
 0xacf   :  { %v597_v45 = vmul.f32 %v595_v44, %v580_v37  ;;  %v171_v44 = vadd.f32 %v1596_v0, %v1539_v12 }
 0xad1   :  { %600 = vrot.lane.b32.xlu1 %v597_v45, %s1453_s11 }
 0xb43   :  { %v601_v46 = vpop.permute.xlu1 %600 }
 0xb44   :  { %1255 = vmatmul.mubr.msk.f32.vlgmr.msra.gmra.mrb[10].mxu0 %vm192_vm6, %v601_v46 }
 0xb45   :  { %1339 = vmatpush3.bf16.msra.mxu0 %v1500_v4  ;;  %1276 = vmatprep.mubr.msk.f32.mxu0 %vm1450_vm2, %v1451_v10 }
 0xb46   :  { %1340 = vmatprep.subr.bf16.mxu0 %v1449_v3 }
 0xb49   :  { %1342 = vmatpush3.bf16.msra.mxu0 %v1517_v9 }
 0xb4a   :  { %1349 = vmatprep.subr.bf16.mxu0 %v1449_v3 }
 0xc17   :  { %v670_v48 = vpop.f32.mrb[10].mxu0 }
 0xc18   :  { %v674_v49 = vadd.f32 %v670_v48, %v156_v47  ;;  %v1256_v50 = vpop.f32.mrb[11].mxu0 }
 0xc1a   :  { %v1125_v51 = vmul.f32 -1.442695, %v674_v49 }
 0xc1c   :  { %1393 = vpow2.f32 %v1125_v51 }
 0xc1d   :  { %1395 = vtanh.f32 %v674_v49 }
 0xc26   :  { %v1394_v52 = vpop.eup %1393 }
 0xc27   :  { %v679_v53 = vadd.f32 1.0, %v1394_v52  ;;  %v1396_v54 = vpop.eup %1395 }
 0xc29   :  { %1397 = vrcp.f32 %v679_v53 }
 0xc33   :  { %v1398_v55 = vpop.eup %1397 }
 0xc34   :  { %v682_v56 = vsel %vm1542_vm5, %v1396_v54, %v1398_v55 }
 0xc35   :  { %685 = vrot.lane.b32.xlu0 %v682_v56, %s1452_s2  ;;  %v683_v59 = vmul.f32 %v682_v56, %v591_v42 }
 0xca7   :  { %v686_v57 = vpop.permute.xlu0 %685 }
 0xca8   :  { %v688_v58 = vmul.f32 %v686_v57, %v682_v56  ;;  %v1006_v57 = vld [vmem:[%s1710_s4] sm:$0xff] }
 0xcaa   :  { %690 = vrot.lane.b32.xlu1 %v688_v58, %s1453_s11  ;;  %v1007_v58 = vld [vmem:[%s1710_s4 + $0x8] sm:$0xff] }
 0xd1c   :  { %v691_v60 = vpop.permute.xlu1 %690 }
 0xd1d   :  { %v693_v61 = vadd.f32 %v691_v60, %v683_v59  ;;  %v1350_v59 = vpack.c.bf16 %v1007_v58, %v1006_v57  ;;  %v1009_v60 = vld [vmem:[%s1710_s4 + $0x18] sm:$0xff]  ;;  %s1454_s4 = smov [#allocation3]  }
 0xd1e   :  { %s1099_s1 = sshll.u32 %s1454_s4, 4  ;;  %s1100_s1 = int_to_ptr.vmem [resolvable:$true] %s1099_s1 }
 0xd1f   :  { %1399 = vtanh.f32 %v693_v61  ;;  %s1425_s9 = scalar_lea.vmem %s1100_s1, 128  ;;  %p1430_p1 = scmp.lt.s32.totalorder %s1100_s1, %s1100_s1 }
 0xd20   :  { %p1426_p0 = scmp.ne.s32.totalorder %s1100_s1, %s1425_s9  ;;  %p1431_p2 = scmp.lt.s32.totalorder %s1425_s9, %s1425_s9 }
 0xd22   :  { %p1432_p3 = por %p1431_p2, %p1430_p1 }
 0xd24   :  { %p1433_p4 = pnand %p1432_p3, %p1426_p0 }
 0xd29   :  { %v1400_v63 = vpop.eup %1399 }
 0xd2a   :  { %696 = vrot.lane.b32.xlu0 %v1400_v63, %s1452_s2 }
 0xd9c   :  { %v697_v2 = vpop.permute.xlu0 %696 }
 0xd9d   :  { %v699_v5 = vmul.f32 %v697_v2, %v682_v56 }
 0xd9f   :  { %702 = vrot.lane.b32.xlu1 %v699_v5, %s1453_s11 }
 0xe11   :  { %v703_v6 = vpop.permute.xlu1 %702 }
 0xe12   :  { %1266 = vmatmul.mubr.msk.f32.vlgmr.msra.gmra.mrb[6].mxu1 %vm192_vm6, %v703_v6 }
 0xe13   :  { %1345 = vmatpush3.bf16.msra.mxu1 %v1500_v4  ;;  %1287 = vmatprep.mubr.msk.f32.mxu1 %vm1450_vm2, %v1451_v10 }
 0xe14   :  { %1346 = vmatprep.subr.bf16.mxu1 %v1449_v3 }
 0xe17   :  { %1348 = vmatpush3.bf16.msra.mxu1 %v1517_v9 }
 0xee5   :  { %v772_v8 = vpop.f32.mrb[6].mxu1 }
 0xee6   :  { %v776_v11 = vadd.f32 %v772_v8, %v161_v7  ;;  %v1267_v13 = vpop.f32.mrb[7].mxu1  ;;  %v1132_v7 = vld [vmem:[%s1711_s5] ss:$0 sm:$0xff] }
 0xee8   :  { %v1127_v14 = vmul.f32 -1.442695, %v776_v11 }
 0xeea   :  { %1401 = vpow2.f32 %v1127_v14 }
 0xeeb   :  { %1403 = vtanh.f32 %v776_v11 }
 0xef4   :  { %v1402_v15 = vpop.eup %1401 }
 0xef5   :  { %v781_v16 = vadd.f32 1.0, %v1402_v15  ;;  %v1404_v4 = vpop.eup %1403 }
 0xef7   :  { %1405 = vrcp.f32 %v781_v16 }
 0xf01   :  { %v1406_v17 = vpop.eup %1405 }
 0xf02   :  { %v784_v18 = vsel %vm1542_vm5, %v1404_v4, %v1406_v17 }
 0xf03   :  { %787 = vrot.lane.b32.xlu0 %v784_v18, %s1452_s2  ;;  %v785_v62 = vmul.f32 %v784_v18, %v693_v61  ;;  %v1353_v61 = vpack.c.bf16 %v1009_v60, %v1008_v23 }
 0xf75   :  { %v788_v9 = vpop.permute.xlu0 %787 }
 0xf76   :  { %v790_v19 = vmul.f32 %v788_v9, %v784_v18 }
 0xf78   :  { %792 = vrot.lane.b32.xlu1 %v790_v19, %s1453_s11 }
 0xfea   :  { %v793_v20 = vpop.permute.xlu1 %792 }
 0xfeb   :  { %v795_v21 = vadd.f32 %v793_v20, %v785_v62 }
 0xfed   :  { %1407 = vtanh.f32 %v795_v21 }
 0xff7   :  { %v1408_v22 = vpop.eup %1407 }
 0xff8   :  { %798 = vrot.lane.b32.xlu0 %v1408_v22, %s1452_s2 }
0x106a   :  { %v799_v24 = vpop.permute.xlu0 %798 }
0x106b   :  { %v801_v25 = vmul.f32 %v799_v24, %v784_v18 }
0x106d   :  { %804 = vrot.lane.b32.xlu1 %v801_v25, %s1453_s11 }
0x10df   :  { %v805_v26 = vpop.permute.xlu1 %804 }
0x10e0   :  { %1277 = vmatmul.mubr.msk.f32.vlgmr.msra.gmra.mrb[12].mxu0 %vm192_vm6, %v805_v26 }
0x10e1   :  { %1298 = vmatprep.mubr.msk.f32.mxu0 %vm1450_vm2, %v1451_v10  ;;  %1351 = vmatpush3.bf16.msra.mxu0 %v1350_v59 }
0x10e2   :  { %1352 = vmatprep.subr.bf16.mxu0 %v1449_v3 }
0x10e5   :  { %1354 = vmatpush3.bf16.msra.mxu0 %v1353_v61 }
0x11b3   :  { %v874_v28 = vpop.f32.mrb[12].mxu0 }
0x11b4   :  { %v878_v29 = vadd.f32 %v874_v28, %v166_v27  ;;  %v1278_v30 = vpop.f32.mrb[13].mxu0 }
0x11b6   :  { %v1129_v31 = vmul.f32 -1.442695, %v878_v29 }
0x11b8   :  { %1409 = vpow2.f32 %v1129_v31 }
0x11b9   :  { %1411 = vtanh.f32 %v878_v29 }
0x11c2   :  { %v1410_v32 = vpop.eup %1409 }
0x11c3   :  { %v883_v33 = vadd.f32 1.0, %v1410_v32  ;;  %v1412_v34 = vpop.eup %1411 }
0x11c5   :  { %1413 = vrcp.f32 %v883_v33 }
0x11cf   :  { %v1414_v35 = vpop.eup %1413 }
0x11d0   :  { %v886_v36 = vsel %vm1542_vm5, %v1412_v34, %v1414_v35 }
0x11d1   :  { %889 = vrot.lane.b32.xlu0 %v886_v36, %s1452_s2  ;;  %v887_v1 = vmul.f32 %v886_v36, %v795_v21 }
0x1243   :  { %v890_v10 = vpop.permute.xlu0 %889 }
0x1244   :  { %v892_v37 = vmul.f32 %v890_v10, %v886_v36 }
0x1246   :  { %894 = vrot.lane.b32.xlu1 %v892_v37, %s1453_s11 }
0x12b8   :  { %v895_v38 = vpop.permute.xlu1 %894 }
0x12b9   :  { %v897_v39 = vadd.f32 %v895_v38, %v887_v1 }
0x12bb   :  { %1415 = vtanh.f32 %v897_v39 }
0x12c5   :  { %v1416_v40 = vpop.eup %1415 }
0x12c6   :  { %900 = vrot.lane.b32.xlu0 %v1416_v40, %s1452_s2 }
0x1338   :  { %v901_v41 = vpop.permute.xlu0 %900 }
0x1339   :  { %v903_v42 = vmul.f32 %v901_v41, %v886_v36 }
0x133b   :  { %906 = vrot.lane.b32.xlu1 %v903_v42, %s1453_s11 }
0x13ad   :  { %v907_v43 = vpop.permute.xlu1 %906 }
0x13ae   :  { %1288 = vmatmul.mubr.msk.f32.vlgmr.msra.gmra.mrb[8].mxu1 %vm192_vm6, %v907_v43 }
0x1481   :  { %v976_v45 = vpop.f32.mrb[8].mxu1 }
0x1482   :  { %v980_v46 = vadd.f32 %v976_v45, %v171_v44  ;;  %v1289_v47 = vpop.f32.mrb[9].mxu1 }
0x1484   :  { %v1131_v48 = vmul.f32 -1.442695, %v980_v46 }
0x1486   :  { %1417 = vpow2.f32 %v1131_v48 }
0x1487   :  { %1419 = vtanh.f32 %v980_v46 }
0x1490   :  { %v1418_v49 = vpop.eup %1417 }
0x1491   :  { %v985_v50 = vadd.f32 1.0, %v1418_v49  ;;  %v1420_v51 = vpop.eup %1419 }
0x1493   :  { %1421 = vrcp.f32 %v985_v50 }
0x149d   :  { %v1422_v52 = vpop.eup %1421 }
0x149e   :  { %v988_v53 = vsel %vm1542_vm5, %v1420_v51, %v1422_v52 }
0x149f   :  { %991 = vrot.lane.b32.xlu0 %v988_v53, %s1452_s2  ;;  %v989_v12 = vmul.f32 %v988_v53, %v897_v39 }
0x1511   :  { %v992_v54 = vpop.permute.xlu0 %991 }
0x1512   :  { %v994_v55 = vmul.f32 %v992_v54, %v988_v53 }
0x1514   :  { %996 = vrot.lane.b32.xlu1 %v994_v55, %s1453_s11 }
0x1586   :  { %v997_v0 = vpop.permute.xlu1 %996 }
0x1587   :  { %v999_v56 = vadd.f32 %v997_v0, %v989_v12 }
0x1589   :  { %1423 = vtanh.f32 %v999_v56 }
0x1593   :  { %v1424_v63 = vpop.eup %1423 }
0x1594   :  { %1002 = vrot.lane.b32.xlu0 %v1424_v63, %s1452_s2 }
0x1606   :  { %v1003_v2 = vpop.permute.xlu0 %1002 }
0x1607   :  { %v1005_v5 = vmul.f32 %v1003_v2, %v988_v53 }
0x1609   :  { %1018 = vrot.lane.b32.xlu1 %v1005_v5, %s1453_s11 }
0x167b   :  { %v1019_v6 = vpop.permute.xlu1 %1018 }
0x167c   :  { %1299 = vmatmul.mubr.msk.f32.vlgmr.msra.gmra.mrb[14].mxu0 %vm192_vm6, %v1019_v6 }
0x174f   :  { %v1088_v8 = vpop.f32.mrb[14].mxu0 }
0x1750   :  { %v1089_v11 = vadd.f32 %v1132_v7, %v1088_v8  ;;  %v1300_v3 = vpop.f32.mrb[15].mxu0 }
0x1752   :  { %1092 = vst [vmem:[#allocation3] sm:$0xff] %v1089_v11 }
0x1753   :  { %1436 = shalt.err (!%p1433_p4)
}
0x1754   :  { %s1437_s2 = scalar_lea.hbm %s1712_s6, 128 }
0x1755   :  { %p1438_p5 = scmp.ne.s32.totalorder %s1712_s6, %s1437_s2  ;;  %p1441_p6 = scmp.lt.u32.totalorder %s1437_s2, %s1712_s6 }
0x1757   :  { %p1443_p7 = pnand %p1441_p6, %p1438_p5 }
0x1759   :  { %1446 = shalt.err (!%p1443_p7)
}
0x175a   :  { %1102 = dma.vmem_to_hbm [thread:$0]  %s1100_s1, 128, %s1712_s6, [#allocation4]  }
0x175b   :  { %1447 = dma.done.wait [#allocation4], 128  }
0x175c   :  { %1448 = vsyncadd [#allocation4], 4294967168 }
0x175d   :  { %1106 = vsyncpa [#allocation4], 1 }

</bundles_post_ra>
